<compile_context>
chip_gen: v6e
topology: v6e:2x2x1
jax: 0.10.0
libtpu: 0.0.40
codegen_flags: <defaults>
</compile_context>

<pallas_src>
import math

import jax
import jax.numpy as jnp
from jax.experimental import pallas as pl
from jax.experimental.pallas import tpu as pltpu


# ----------------------------------------------------------------------------
# Parameter setup (matches the PyTorch __init__)
# ----------------------------------------------------------------------------
def make_positional_encoding_table(d_model: int, max_len: int = 5000) -> jnp.ndarray:
    """Sinusoidal PE table identical to the PyTorch buffer; shape (max_len, d_model), f32."""
    assert d_model % 2 == 0, "d_model must be even (matches PyTorch module)"
    position = jnp.arange(0, max_len, dtype=jnp.float32)[:, None]            # (L, 1)
    div_term = jnp.exp(
        jnp.arange(0, d_model, 2, dtype=jnp.float32) * (-math.log(10000.0) / d_model)
    )                                                                         # (D/2,)
    args = position * div_term                                                # (L, D/2)
    pe = jnp.zeros((max_len, d_model), dtype=jnp.float32)
    pe = pe.at[:, 0::2].set(jnp.sin(args))
    pe = pe.at[:, 1::2].set(jnp.cos(args))
    return pe


# ----------------------------------------------------------------------------
# Kernels
# ----------------------------------------------------------------------------
def _pe_add_seq_kernel(x_ref, pe_ref, o_ref):
    # Seq-tiled path: x_ref/o_ref are (ts, D2) (batch axis squeezed), pe_ref is
    # (ts, D2) f32.  Same-shape VPU add; dtype promotion happens here (free).
    od = o_ref.dtype
    o_ref[...] = x_ref[...].astype(od) + pe_ref[...].astype(od)


def _pe_add_batch_kernel(x_ref, pe_ref, o_ref):
    # Batch-tiled path: x_ref/o_ref are (bt, S2, D2), pe_ref is (S2, D2) f32 and
    # stays resident (constant block index).  Leading-axis broadcast is free
    # VPU filler in an HBM-bound kernel.
    od = o_ref.dtype
    o_ref[...] = x_ref[...].astype(od) + pe_ref[...].astype(od)


# ----------------------------------------------------------------------------
# Tiling helpers
# ----------------------------------------------------------------------------
def _lane_pack_factor(d: int, s: int) -> int:
    """Smallest k with (k*d) % 128 == 0 and s % k == 0; 1 if no such packing."""
    if d % 128 == 0:
        return 1
    k = 128 // math.gcd(d, 128)
    return k if (s % k == 0) else 1


def _sublane_multiple(*dtypes) -> int:
    """Dtype-native sublane multiple: 8 for f32, 16 for bf16, 32 for int8/fp8."""
    m = 8
    for dt in dtypes:
        m = max(m, 32 // max(1, jnp.dtype(dt).itemsize))
    return m


def _vmem_capacity_bytes() -> int:
    """Physical VMEM per TensorCore; conservative (v7x) fallback if unqueryable."""
    try:
        return int(pltpu.get_tpu_info().vmem_capacity_bytes)
    except Exception:
        return 64 << 20


# ----------------------------------------------------------------------------
# Forward wrapper
# ----------------------------------------------------------------------------
def positional_encoding_forward(
    x: jnp.ndarray,
    pe_table: jnp.ndarray,
    *,
    force_pallas: bool = False,
    block_bytes: int | None = None,
    donate_x: bool = False,
) -> jnp.ndarray:
    """x: (B, S, D); pe_table: (max_len, D) f32. Returns x + pe[:S] (broadcast over batch)."""
    B, S, D = x.shape
    assert pe_table.shape[0] >= S and pe_table.shape[1] == D

    out_dtype = jnp.result_type(x.dtype, pe_table.dtype)   # PyTorch promotion semantics
    x_item = jnp.dtype(x.dtype).itemsize
    pe_item = jnp.dtype(pe_table.dtype).itemsize
    out_item = jnp.dtype(out_dtype).itemsize

    # Tiny inputs: pallas_call launch + ~0.35 us/step overhead dominates; XLA's
    # fused broadcast-add is already at HBM roofline for a trivial elementwise op.
    total_bytes = B * S * D * (x_item + out_item) + S * D * pe_item
    if not force_pallas and total_bytes < (4 << 20):
        return x + pe_table[:S, :][None, :, :]

    # Lane-dense repacking of the last dim (identical view of the trailing (S, D)
    # axes of both x and pe, so the add semantics are unchanged).
    k = _lane_pack_factor(D, S)
    S2, D2 = S // k, D * k
    x2 = x.reshape(B, S2, D2)
    pe2 = pe_table[:S, :].reshape(S2, D2)     # slice/reshape only -- no dtype cast here

    # Per-generation VMEM budgeting.  x, pe, out are each double-buffered by the
    # BlockSpec pipeline, so resident VMEM ~= 6x the per-block budget.  Cap the
    # resident footprint at min(VMEM/2, 32 MiB): ~5.3 MiB blocks everywhere,
    # safely under v7x's 64 MiB physical and well past the diminishing-returns
    # point of the f32-add tile sweep (512->85%, 1024->86% of roofline).
    vmem_cap = _vmem_capacity_bytes()
    resident_budget = min(vmem_cap // 2, 32 << 20)
    if block_bytes is None:
        block_bytes = max(resident_budget // 6, 64 << 10)

    sub = _sublane_multiple(x.dtype, pe_table.dtype, out_dtype)
    per_batch_x_bytes = S2 * D2 * x_item

    if per_batch_x_bytes <= block_bytes:
        # ---- Batch-tiled: group batch rows so per-block bytes stay near budget. ----
        bt = int(max(1, min(B, block_bytes // max(1, per_batch_x_bytes))))
        grid = (pl.cdiv(B, bt),)
        in_specs = [
            pl.BlockSpec((bt, S2, D2), lambda i: (i, 0, 0)),
            pl.BlockSpec((S2, D2), lambda i: (0, 0)),     # constant index -> stays resident
        ]
        out_spec = pl.BlockSpec((bt, S2, D2), lambda i: (i, 0, 0))
        kernel = _pe_add_batch_kernel
        x_blk = bt * S2 * D2 * x_item
        pe_blk = S2 * D2 * pe_item
        out_blk = bt * S2 * D2 * out_item
    else:
        # ---- Seq-tiled: batch squeezed; flattened 1-D grid for 2-TC balance. ----
        rows = max(sub, block_bytes // max(1, D2 * x_item))
        ts = max(sub, (rows // sub) * sub)
        ts = min(ts, S2)
        if ts < S2 and S2 % ts != 0:
            # Prefer a divisor of S2 (multiple of sub) in [ts/2, ts] so there is
            # no partial edge tile; otherwise keep ts (edge blocks are handled).
            lo = max(sub, (ts // 2 // sub) * sub)
            d = (ts // sub) * sub
            while d >= lo:
                if S2 % d == 0:
                    ts = d
                    break
                d -= sub
        nt = pl.cdiv(S2, ts)
        # Flattened grid, seq-outer / batch-inner: pe re-DMAs only when the seq
        # tile changes (every B steps), and a single parallel axis splits evenly
        # across v7x's two TensorCores even for skewed (nt, B) shapes.
        grid = (nt * B,)
        in_specs = [
            pl.BlockSpec((pl.Squeezed(), ts, D2), lambda t: (t % B, t // B, 0)),
            pl.BlockSpec((ts, D2), lambda t: (t // B, 0)),
        ]
        out_spec = pl.BlockSpec((pl.Squeezed(), ts, D2), lambda t: (t % B, t // B, 0))
        kernel = _pe_add_seq_kernel
        x_blk = ts * D2 * x_item
        pe_blk = ts * D2 * pe_item
        out_blk = ts * D2 * out_item

    # Explicit VMEM limit sized from the actual double-buffered footprint
    # (+16 MiB headroom for compiler scratch), never exceeding physical VMEM.
    resident_est = 2 * (x_blk + pe_blk + out_blk)
    vmem_limit = int(min(vmem_cap, resident_est + (16 << 20)))

    call_kwargs = {}
    if donate_x and x.dtype == out_dtype:
        call_kwargs["input_output_aliases"] = {0: 0}

    out = pl.pallas_call(
        kernel,
        out_shape=jax.ShapeDtypeStruct((B, S2, D2), out_dtype),
        grid_spec=pltpu.PrefetchScalarGridSpec(
            num_scalar_prefetch=0,
            grid=grid,
            in_specs=in_specs,
            out_specs=out_spec,
        ),
        compiler_params=pltpu.CompilerParams(
            dimension_semantics=("parallel",),
            vmem_limit_bytes=vmem_limit,
        ),
        **call_kwargs,
    )(x2, pe2)

    return out.reshape(B, S, D)


# ----------------------------------------------------------------------------
# Self-test
# ----------------------------------------------------------------------------
if __name__ == "__main__":
    key = jax.random.PRNGKey(0)
    MAX_LEN = 5000

    # --- 1) Small shape consistent with the module: batch=2, seq=8, d_model=32
    #        (batch-tiled path, lane-packed k=4 -> last dim 128). ---
    B, S, D = 2, 8, 32
    pe_table = make_positional_encoding_table(D, MAX_LEN)
    key, k1 = jax.random.split(key)
    x = jax.random.normal(k1, (B, S, D), dtype=jnp.float32)
    out = jax.block_until_ready(positional_encoding_forward(x, pe_table, force_pallas=True))
    ref = x + pe_table[:S, :][None, :, :]
    assert out.shape == (B, S, D) and out.dtype == jnp.float32
    assert jnp.allclose(out, ref, atol=1e-6), "mismatch (small / batch-tiled)"

    # --- 2) Seq-tiled pipelined path (divisible tiles), small forced block budget. ---
    B2, S2_, D2_ = 2, 512, 256
    pe_table2 = make_positional_encoding_table(D2_, MAX_LEN)
    key, k2 = jax.random.split(key)
    x2 = jax.random.normal(k2, (B2, S2_, D2_), dtype=jnp.float32)
    out2 = jax.block_until_ready(
        positional_encoding_forward(x2, pe_table2, force_pallas=True, block_bytes=64 * 1024)
    )
    ref2 = x2 + pe_table2[:S2_, :][None, :, :]
    assert jnp.allclose(out2, ref2, atol=1e-6), "mismatch (seq-tiled)"

    # --- 3) Seq-tiled path with a partial (non-divisible) edge tile. ---
    B3, S3, D3 = 2, 568, 128
    pe_table3 = make_positional_encoding_table(D3, MAX_LEN)
    key, k3 = jax.random.split(key)
    x3 = jax.random.normal(k3, (B3, S3, D3), dtype=jnp.float32)
    out3 = jax.block_until_ready(
        positional_encoding_forward(x3, pe_table3, force_pallas=True, block_bytes=32 * 1024)
    )
    ref3 = x3 + pe_table3[:S3, :][None, :, :]
    assert jnp.allclose(out3, ref3, atol=1e-6), "mismatch (partial edge tile)"

    # --- 4) bf16 input: in-kernel cast, PyTorch-style promotion to f32 output. ---
    B4, S4, D4 = 2, 64, 128
    pe_table4 = make_positional_encoding_table(D4, MAX_LEN)
    key, k4 = jax.random.split(key)
    x4 = jax.random.normal(k4, (B4, S4, D4), dtype=jnp.bfloat16)
    out4 = jax.block_until_ready(positional_encoding_forward(x4, pe_table4, force_pallas=True))
    ref4 = x4 + pe_table4[:S4, :][None, :, :]          # bf16 + f32 -> f32
    assert out4.dtype == jnp.float32
    assert jnp.allclose(out4, ref4, atol=1e-6), "mismatch (bf16 promotion)"

    print("KERNEL_OK")
</pallas_src>

<mosaic_0001>
module attributes {stable_mosaic.version = 11 : i64} {
  func.func @_pe_add_batch_kernel(%arg0: i32, %arg1: memref<2x2x128xf32, #tpu.memory_space<vmem>>, %arg2: memref<2x128xf32, #tpu.memory_space<vmem>>, %arg3: memref<2x2x128xf32, #tpu.memory_space<vmem>>) attributes {dimension_semantics = [#tpu.dimension_semantics<parallel>], iteration_bounds = array<i64: 1>, scalar_prefetch = 0 : i64, scratch_operands = 0 : i64, tpu.core_type = #tpu.core_type<tc>, window_params = [{transform_indices = @transform_0, window_bounds = array<i64: 2, 2, 128>}, {pipeline_mode = #tpu.pipeline_mode<synchronous>, transform_indices = @transform_1, window_bounds = array<i64: 2, 128>}, {transform_indices = @transform_2, window_bounds = array<i64: 2, 2, 128>}]} {
    %c0 = arith.constant 0 : index
    %c0_0 = arith.constant 0 : index
    %c0_1 = arith.constant 0 : index
    %0 = vector.load %arg1[%c0, %c0_0, %c0_1] : memref<2x2x128xf32, #tpu.memory_space<vmem>>, vector<2x2x128xf32>
    %c0_2 = arith.constant 0 : index
    %c0_3 = arith.constant 0 : index
    %1 = vector.load %arg2[%c0_2, %c0_3] : memref<2x128xf32, #tpu.memory_space<vmem>>, vector<2x128xf32>
    %2 = vector.shape_cast %1 : vector<2x128xf32> to vector<1x2x128xf32>
    %3 = vector.broadcast %2 : vector<1x2x128xf32> to vector<2x2x128xf32>
    %4 = arith.addf %0, %3 : vector<2x2x128xf32>
    %c0_4 = arith.constant 0 : index
    %c0_5 = arith.constant 0 : index
    %c0_6 = arith.constant 0 : index
    %5 = vector.load %arg3[%c0_4, %c0_5, %c0_6] : memref<2x2x128xf32, #tpu.memory_space<vmem>>, vector<2x2x128xf32>
    tpu.vector_store %arg3[%c0_4, %c0_5, %c0_6], %4 {strides = array<i32>} : memref<2x2x128xf32, #tpu.memory_space<vmem>>, vector<2x2x128xf32>,
    return
  }
  func.func @transform_0(%arg0: i32) -> (i32, i32, i32) {
    %c0_i32 = arith.constant 0 : i32
    %c0_i32_0 = arith.constant 0 : i32
    %c0_i32_1 = arith.constant 0 : i32
    return %arg0, %c0_i32, %c0_i32_0 : i32, i32, i32
  }
  func.func @transform_1(%arg0: i32) -> (i32, i32) {
    %c0_i32 = arith.constant 0 : i32
    %c0_i32_0 = arith.constant 0 : i32
    %c0_i32_1 = arith.constant 0 : i32
    return %c0_i32, %c0_i32_0 : i32, i32
  }
  func.func @transform_2(%arg0: i32) -> (i32, i32, i32) {
    %c0_i32 = arith.constant 0 : i32
    %c0_i32_0 = arith.constant 0 : i32
    %c0_i32_1 = arith.constant 0 : i32
    return %arg0, %c0_i32, %c0_i32_0 : i32, i32, i32
  }
}

</mosaic_0001>

<bundles_post_ra>
// kernel: tpu_custom_call.1
= control target key start
LH: loop header
LB: loop body
LE: loop exit
PB: predicated region body
PF: predicated region fallthrough
CT: control target
= control target key end

     0   :  { %7 = vsyncpa [#allocation3], 0  ;;  %s169_s0 = inlined_call_operand.hbm [shape: f32[2,2,128], index: 0, kind: input, shape index: {}]   ;;  %s170_s1 = inlined_call_operand.hbm [shape: f32[2,128], index: 1, kind: input, shape index: {}]   ;;  %s171_s2 = inlined_call_operand.hbm [shape: f32[2,2,128], index: 2, kind: output, shape index: {}]  }
   0x1   :  { %8 = vsyncpa [#allocation6], 0 }
   0x2   :  { %9 = vsyncpa [#allocation4], 0  ;;  %s134_s9 = smov [#allocation2]  }
   0x3   :  { %s15_s10 = sshll.u32 %s134_s9, 4  ;;  %s16_s10 = int_to_ptr.vmem [resolvable:$true] %s15_s10 }
   0x4   :  { %s76_s11 = scalar_lea.vmem %s16_s10, 64  ;;  %p81_p1 = scmp.lt.s32.totalorder %s16_s10, %s16_s10 }
   0x5   :  { %p77_p0 = scmp.ne.s32.totalorder %s16_s10, %s76_s11  ;;  %p82_p2 = scmp.lt.s32.totalorder %s76_s11, %s76_s11 }
   0x7   :  { %p83_p3 = por %p82_p2, %p81_p1 }
   0x9   :  { %p84_p4 = pnand %p83_p3, %p77_p0 }
   0xb   :  { %87 = shalt.err (!%p84_p4)
}
   0xc   :  { %s135_s12 = smov 32   ;;  %s136_s13 = smov 2  }
   0xd   :  { %21 = dma.hbm_to_vmem [thread:$0]  %s169_s0, 64, %s16_s10, [#allocation3], %s135_s12, %s135_s12, %s136_s13  }
   0xe   :  { %s137_s16 = smov [#allocation5]  }
   0xf   :  { %s28_s17 = sshll.u32 %s137_s16, 4  ;;  %s29_s17 = int_to_ptr.vmem [resolvable:$true] %s28_s17 }
  0x10   :  { %s96_s18 = scalar_lea.vmem %s29_s17, 32  ;;  %p101_p6 = scmp.lt.s32.totalorder %s29_s17, %s29_s17 }
  0x11   :  { %p97_p5 = scmp.ne.s32.totalorder %s29_s17, %s96_s18  ;;  %p102_p7 = scmp.lt.s32.totalorder %s96_s18, %s96_s18 }
  0x13   :  { %p103_p8 = por %p102_p7, %p101_p6 }
  0x15   :  { %p104_p9 = pnand %p103_p8, %p97_p5 }
  0x17   :  { %107 = shalt.err (!%p104_p9)
}
  0x18   :  { %31 = dma.hbm_to_vmem [thread:$0]  %s170_s1, 32, %s29_s17, [#allocation6]  }
  0x19   :  { %128 = dma.done.wait [#allocation3], 64  }
  0x1a   :  { %129 = vsyncadd [#allocation3], 4294967232 }
  0x1b   :  { %130 = dma.done.wait [#allocation6], 32  }
  0x1c   :  { %131 = vsyncadd [#allocation6], 4294967264  ;;  %s138_s21 = smov [#allocation7]   ;;  %v38_v0 = vld [vmem:[#allocation2] sm:$0x3] }
  0x1d   :  { %s50_s0 = sshll.u32 %s138_s21, 4  ;;  %v40_v1 = vld [vmem:[#allocation5] sm:$0x3]  ;;  %v39_v2 = vld [vmem:[#allocation2 + $0x2] sm:$0x3]  ;;  %s51_s0 = int_to_ptr.vmem [resolvable:$true] %s50_s0 }
  0x1e   :  { %v41_v3 = vadd.f32 %v40_v1, %v38_v0  ;;  %v42_v4 = vadd.f32 %v40_v1, %v39_v2  ;;  %s108_s22 = scalar_lea.vmem %s51_s0, 64  ;;  %p113_p11 = scmp.lt.s32.totalorder %s51_s0, %s51_s0 }
  0x1f   :  { %p109_p10 = scmp.ne.s32.totalorder %s51_s0, %s108_s22  ;;  %p114_p12 = scmp.lt.s32.totalorder %s108_s22, %s108_s22 }
  0x20   :  { %43 = vst [vmem:[#allocation7] sm:$0x3] %v41_v3  ;;  %44 = vst [vmem:[#allocation7 + $0x2] sm:$0x3] %v42_v4 }
  0x21   :  { %p115_p13 = por %p114_p12, %p113_p11 }
  0x23   :  { %p116_p0 = pnand %p115_p13, %p109_p10 }
  0x25   :  { %119 = shalt.err (!%p116_p0)
}
  0x26   :  { %56 = dma.vmem_to_hbm [thread:$0]  %s51_s0, 64, %s171_s2, [#allocation4], %s135_s12, %s135_s12, %s136_s13  }
  0x27   :  { %132 = dma.done.wait [#allocation4], 64  }
  0x28   :  { %133 = vsyncadd [#allocation4], 4294967232 }
  0x29   :  { %60 = vsyncpa [#allocation3], 1 }
  0x2a   :  { %61 = vsyncpa [#allocation6], 1 }
  0x2b   :  { %62 = vsyncpa [#allocation4], 1 }

</bundles_post_ra>
